<compile_context>
chip_gen: v7x
topology: tpu7x:2x2x1
jax: 0.10.0
libtpu: 0.0.40
codegen_flags: <defaults>
</compile_context>

<pallas_src>
import jax
import jax.numpy as jnp
from jax import lax
from jax.experimental import pallas as pl
from jax.experimental.pallas import tpu as pltpu

_LANES = 128
_SUBLANES = 8
_reduction_modes = ('none', 'mean', 'sum')


def _round_up(x, m):
    return ((x + m - 1) // m) * m


def _make_partial_sum_kernel(br, rows_valid, needs_mask):
    """Per grid step: (8, 128) f32 partial sums of (p - t)^2 over a block."""

    def kernel(p_ref, t_ref, o_ref):
        d = p_ref[...].astype(jnp.float32) - t_ref[...].astype(jnp.float32)
        sq = d * d
        if needs_mask:
            # Zero out grid-remainder rows of the (partial) last block.
            row = (pl.program_id(0) * br
                   + lax.broadcasted_iota(jnp.int32, (br, _LANES), 0))
            sq = jnp.where(row < rows_valid, sq, 0.0)
        # (br, 128) -> (br/8, 8, 128) is a native-tile view; the axis-0 sum is
        # pure vreg adds on the VPU (no cross-lane XLU reduce, no scalar splat).
        o_ref[...] = jnp.sum(
            sq.reshape(br // _SUBLANES, _SUBLANES, _LANES), axis=0)

    return kernel


def _make_elementwise_kernel(loss_weight):
    """Per grid step: elementwise loss_weight * (p - t)^2 over a block."""
    lw = float(loss_weight)

    def kernel(p_ref, t_ref, o_ref):
        d = p_ref[...].astype(jnp.float32) - t_ref[...].astype(jnp.float32)
        sq = d * d
        if lw != 1.0:
            sq = sq * jnp.float32(lw)   # fold loss_weight in, applied in f32
        o_ref[...] = sq.astype(o_ref.dtype)

    return kernel


def mse_loss(pred, target, weight=None, loss_weight=1.0, reduction='mean',
             sample_wise=False, block_rows=None):
    """Pallas TPU implementation of MSELoss.forward (weight=None path)."""
    if reduction not in _reduction_modes:
        raise ValueError(f'Unsupported reduction mode: {reduction}. '
                         f'Supported ones are: {list(_reduction_modes)}')
    if weight is not None:
        # TODO(synk): weighted / sample_wise masked-loss branch not ported.
        raise NotImplementedError('weight is not supported in the Pallas port')
    assert pred.shape == target.shape, 'pred/target shape mismatch'

    orig_shape = pred.shape
    n_elem = int(pred.size)
    itemsize = jnp.dtype(pred.dtype).itemsize

    if block_rows is None:
        if reduction == 'none':
            # 2 inputs + 1 output, double-buffered.
            block_rows = 8192 if itemsize <= 2 else 4096
        else:
            # 2 inputs double-buffered + tiny (8,128) partial output.
            block_rows = 16384 if itemsize <= 2 else 8192
    block_rows = _round_up(max(block_rows, _SUBLANES), _SUBLANES)

    # Lane-dense layout: (rows, 128).
    #   * Fast path (no HBM copy): n_elem 128-aligned and at least 8 rows —
    #     the reshape is a pure view/bitcast.
    #   * Fallback: one flat zero-pad to the next 1024 multiple (pads give
    #     (0-0)^2 = 0, so they never perturb the reduction).
    rows_raw = n_elem // _LANES
    padded = (n_elem % _LANES != 0) or (rows_raw < _SUBLANES)
    if padded:
        flat_len = _round_up(n_elem, _SUBLANES * _LANES)
        pad = flat_len - n_elem

        def _prep(x):
            return jnp.pad(x.reshape(-1), (0, pad)).reshape(-1, _LANES)
    else:
        flat_len = n_elem

        def _prep(x):
            return x.reshape(-1, _LANES)          # pure view, zero copies

    rows = flat_len // _LANES                      # valid rows (incl. zero pads)

    # Block rows: multiple of 8, never larger than the array, and capped so
    # n_blocks >= 2 when rows allow (keeps both v7x TensorCores busy).
    if rows >= 2 * _SUBLANES:
        br = min(block_rows, _round_up(pl.cdiv(rows, 2), _SUBLANES))
    else:
        br = _SUBLANES
    n_blocks = pl.cdiv(rows, br)
    needs_mask = (n_blocks * br) != rows           # partial last grid block

    p2 = _prep(pred)
    t2 = _prep(target)

    in_specs = [pl.BlockSpec((br, _LANES), lambda i: (i, 0)),
                pl.BlockSpec((br, _LANES), lambda i: (i, 0))]
    cparams = pltpu.CompilerParams(
        dimension_semantics=("parallel",),
        vmem_limit_bytes=32 * 1024 * 1024)

    if reduction == 'none':
        out = pl.pallas_call(
            _make_elementwise_kernel(loss_weight),
            out_shape=jax.ShapeDtypeStruct((rows, _LANES), pred.dtype),
            grid=(n_blocks,),
            in_specs=in_specs,
            # OOB rows of a partial last block are dropped on writeback.
            out_specs=pl.BlockSpec((br, _LANES), lambda i: (i, 0)),
            compiler_params=cparams,
        )(p2, t2)
        if padded:
            out = out.reshape(-1)[:n_elem]
        return out.reshape(orig_shape)             # view when not padded

    # 'mean' / 'sum': (8, 128) f32 partials per block, tiny final reduce in JAX.
    partials = pl.pallas_call(
        _make_partial_sum_kernel(br, rows, needs_mask),
        out_shape=jax.ShapeDtypeStruct((n_blocks * _SUBLANES, _LANES),
                                       jnp.float32),
        grid=(n_blocks,),
        in_specs=in_specs,
        out_specs=pl.BlockSpec((_SUBLANES, _LANES), lambda i: (i, 0)),
        compiler_params=cparams,
    )(p2, t2)
    total = jnp.sum(partials)
    if reduction == 'mean':
        total = total / jnp.float32(n_elem)
    return jnp.float32(loss_weight) * total


class MSELoss:
    """Drop-in equivalent of the PyTorch MSELoss module (forward only)."""

    def __init__(self, loss_weight=1.0, reduction='mean', sample_wise=False):
        if reduction not in _reduction_modes:
            raise ValueError(f'Unsupported reduction mode: {reduction}. '
                             f'Supported ones are: {list(_reduction_modes)}')
        self.loss_weight = loss_weight
        self.reduction = reduction
        self.sample_wise = sample_wise

    def __call__(self, pred, target, weight=None, **kwargs):
        return mse_loss(pred, target, weight=weight,
                        loss_weight=self.loss_weight,
                        reduction=self.reduction,
                        sample_wise=self.sample_wise)


def _reference_mse(pred, target, loss_weight=1.0, reduction='mean'):
    """Pure-JAX reference mirroring the PyTorch module (weight=None)."""
    l = (pred.astype(jnp.float32) - target.astype(jnp.float32)) ** 2
    if reduction == 'mean':
        l = jnp.mean(l)
    elif reduction == 'sum':
        l = jnp.sum(l)
    return loss_weight * l


if __name__ == "__main__":
    key = jax.random.PRNGKey(0)
    k1, k2, k3, k4 = jax.random.split(key, 4)

    pred = jax.random.uniform(k1, (2, 4, 16, 16), dtype=jnp.float32)
    target = jax.random.uniform(k2, (2, 4, 16, 16), dtype=jnp.float32)

    # Default module config: loss_weight=1.0, reduction='mean'.
    loss_mod = MSELoss(loss_weight=1.0, reduction='mean', sample_wise=False)
    loss = jax.block_until_ready(loss_mod(pred, target))
    ref = _reference_mse(pred, target, 1.0, 'mean')
    assert jnp.allclose(loss, ref, rtol=1e-5, atol=1e-6), (loss, ref)

    # 'sum' reduction.
    loss_sum = jax.block_until_ready(mse_loss(pred, target, reduction='sum'))
    ref_sum = _reference_mse(pred, target, 1.0, 'sum')
    assert jnp.allclose(loss_sum, ref_sum, rtol=1e-5, atol=1e-4), (loss_sum, ref_sum)

    # 'none' reduction with loss_weight folded into the kernel.
    loss_none = jax.block_until_ready(
        mse_loss(pred, target, loss_weight=2.0, reduction='none'))
    ref_none = _reference_mse(pred, target, 2.0, 'none')
    assert jnp.allclose(loss_none, ref_none, rtol=1e-5, atol=1e-6)

    # Grid-remainder masking path (rows=24, br=16 -> partial last block).
    p3 = jax.random.uniform(k3, (3, 8, 16, 8), dtype=jnp.float32)
    t3 = jax.random.uniform(k4, (3, 8, 16, 8), dtype=jnp.float32)
    lm = jax.block_until_ready(mse_loss(p3, t3, reduction='mean'))
    rm = _reference_mse(p3, t3, 1.0, 'mean')
    assert jnp.allclose(lm, rm, rtol=1e-5, atol=1e-6), (lm, rm)

    # Non-128-aligned fallback (flat pad) path, sum and none.
    p4 = jax.random.uniform(k3, (3, 5, 7, 9), dtype=jnp.float32)
    t4 = jax.random.uniform(k4, (3, 5, 7, 9), dtype=jnp.float32)
    ls = jax.block_until_ready(mse_loss(p4, t4, reduction='sum'))
    rs = _reference_mse(p4, t4, 1.0, 'sum')
    assert jnp.allclose(ls, rs, rtol=1e-5, atol=1e-4), (ls, rs)
    ln = jax.block_until_ready(mse_loss(p4, t4, reduction='none'))
    rn = _reference_mse(p4, t4, 1.0, 'none')
    assert jnp.allclose(ln, rn, rtol=1e-5, atol=1e-6)

    print("KERNEL_OK")
</pallas_src>

<mosaic_0001>
module attributes {stable_mosaic.version = 11 : i64} {
  func.func @kernel(%arg0: i32, %arg1: memref<8x128xf32, #tpu.memory_space<vmem>>, %arg2: memref<8x128xf32, #tpu.memory_space<vmem>>, %arg3: memref<8x128xf32, #tpu.memory_space<vmem>>) attributes {dimension_semantics = [#tpu.dimension_semantics<parallel>], iteration_bounds = array<i64: 2>, scalar_prefetch = 0 : i64, scratch_operands = 0 : i64, tpu.core_type = #tpu.core_type<tc>, window_params = [{transform_indices = @transform_0, window_bounds = array<i64: 8, 128>}, {transform_indices = @transform_1, window_bounds = array<i64: 8, 128>}, {transform_indices = @transform_2, window_bounds = array<i64: 8, 128>}]} {
    %c0 = arith.constant 0 : index
    %c0_0 = arith.constant 0 : index
    %0 = vector.load %arg1[%c0, %c0_0] : memref<8x128xf32, #tpu.memory_space<vmem>>, vector<8x128xf32>
    %c0_1 = arith.constant 0 : index
    %c0_2 = arith.constant 0 : index
    %1 = vector.load %arg2[%c0_1, %c0_2] : memref<8x128xf32, #tpu.memory_space<vmem>>, vector<8x128xf32>
    %2 = arith.subf %0, %1 : vector<8x128xf32>
    %3 = arith.mulf %2, %2 : vector<8x128xf32>
    %4 = vector.shape_cast %3 : vector<8x128xf32> to vector<1x8x128xf32>
    %cst = arith.constant dense<0.000000e+00> : vector<8x128xf32>
    %5 = vector.multi_reduction <add>, %4, %cst [0] : vector<1x8x128xf32> to vector<8x128xf32>
    %c0_3 = arith.constant 0 : index
    %c0_4 = arith.constant 0 : index
    %6 = vector.load %arg3[%c0_3, %c0_4] : memref<8x128xf32, #tpu.memory_space<vmem>>, vector<8x128xf32>
    tpu.vector_store %arg3[%c0_3, %c0_4], %5 {strides = array<i32>} : memref<8x128xf32, #tpu.memory_space<vmem>>, vector<8x128xf32>,
    return
  }
  func.func @transform_0(%arg0: i32) -> (i32, i32) {
    %c0_i32 = arith.constant 0 : i32
    %c0_i32_0 = arith.constant 0 : i32
    return %arg0, %c0_i32 : i32, i32
  }
  func.func @transform_1(%arg0: i32) -> (i32, i32) {
    %c0_i32 = arith.constant 0 : i32
    %c0_i32_0 = arith.constant 0 : i32
    return %arg0, %c0_i32 : i32, i32
  }
  func.func @transform_2(%arg0: i32) -> (i32, i32) {
    %c0_i32 = arith.constant 0 : i32
    %c0_i32_0 = arith.constant 0 : i32
    return %arg0, %c0_i32 : i32, i32
  }
}

</mosaic_0001>

<bundles_post_ra>
// kernel: tpu_custom_call.1
= control target key start
LH: loop header
LB: loop body
LE: loop exit
PB: predicated region body
PF: predicated region fallthrough
CT: control target
= control target key end

     0   :  { %7 = vsyncpa [#allocation3], 0  ;;  %s734_s0 = inlined_call_operand.hbm [shape: f32[16,128], index: 0, kind: input, shape index: {}]   ;;  %s735_s1 = inlined_call_operand.hbm [shape: f32[16,128], index: 1, kind: input, shape index: {}]   ;;  %s736_s2 = inlined_call_operand.hbm [shape: f32[16,128], index: 2, kind: output, shape index: {}]  }
   0x1   :  { %9 = vsyncpa [#allocation3 + $0x1], 0 }
   0x2   :  { %10 = vsyncpa [#allocation6], 0 }
   0x3   :  { %12 = vsyncpa [#allocation6 + $0x1], 0 }
   0x4   :  { %13 = vsyncpa [#allocation4], 0 }
   0x5   :  { %15 = vsyncpa [#allocation4 + $0x1], 0  ;;  %s525_s9 = smov 0   ;;  %s527_s10 = smov 0  }
   0x6   :  { %s529_s11 = smov 0   ;;  %s531_s12 = smov 0  }
   0x7 LB: > { %s546_s13 = sadd.s32 4294967295, %s505_s12   ;;  %s309_s14 = sadd.s32 4294967294, %s505_s12   ;;  %s505_s12 = sphi %s531_s12, %s755_s12   ;;  %s501_s11 = sphi %s529_s11, %s754_s11   ;;  %s497_s10 = sphi %s527_s10, %s753_s10   ;;  %s493_s9 = sphi %s525_s9, %s752_s9  }
   0x8   : > { %s550_s15 = sadd.s32 1, %s505_s12   ;;  %s28_s16 = sadd.s32 1, %s501_s11 }
   0x9   : > { %s25_s17 = ssub.s32 %s505_s12, %s550_s15  ;;  %p35_p0 = scmp.ne.s32.totalorder %s501_s11, %s497_s10 }
   0xa   : > { %p26_p1 = scmp.eq.s32.totalorder %s25_s17, 0  ;;  %p36_p2 = scmp.eq.s32.totalorder %s505_s12, 0 }
   0xb   : > { %p41_p3 = scmp.ne.s32.totalorder %s497_s10, %s493_s9  ;;  %p42_p4 = scmp.eq.s32.totalorder %s546_s13, 0 }
   0xc   : > { %s562_s18 = scalar_select %p26_p1, %s501_s11, %s28_s16  }
   0xd   : > { %p564_p5 = por %p36_p2, %p35_p0  ;;  %p568_p6 = por %p42_p4, %p41_p3 }
   0xe   : > { %p91_p7 = scmp.eq.s32.totalorder %s546_s13, 1  ;;  %p97_p8 = scmp.eq.s32.totalorder %s309_s14, 1 }
   0xf   : > { %s740_s20 = scalar_select %p568_p6, 1, 0 }
  0x10   : > { %p341_p10 = scmp.lt.s32.totalorder %s505_s12, 2  ;;  %p575_p11 = por %p91_p7, %p35_p0 }
  0x11   : > { %p579_p12 = por %p97_p8, %p41_p3  ;;  %s584_s23 = sand.u32 1, %s501_s11  }
  0x12   : > { %s741_s21 = scalar_select %p575_p11, 1, 0 }
  0x13   : > { %s742_s22 = scalar_select %p579_p12, 1, 0 }
  0x14   : > { %s313_s24 = sshll.u32 %s505_s12, 7  ;;  %s312_s25 = sshll.u32 %s584_s23, 3 }
  0x15   : > { %s593_s28 = scalar_lea.hbm %s734_s0, %s313_s24  ;;  %s121_s29 = scalar_lea.vmem [#allocation2], %s312_s25 }
  0x16   : > { %s128_s30 = sshll.u32 %s121_s29, 4  ;;  %p599_p13 = pnand %p341_p10, %p564_p5  ;;  %s603_s30 = int_to_ptr.vmem [resolvable:$true] %s128_s30 }
  0x17   : > { %s118_s4 = scalar_lea.sflag [#allocation3], %s584_s23  ;;  %s375_s5 = scalar_lea.hbm %s593_s28, 128 }
  0x18   : > { %p376_p2 = scmp.ne.s32.totalorder %s593_s28, %s375_s5  ;;  %p377_p3 = pneg %p599_p13 }
  0x19   : > { %s380_s8 = scalar_lea.hbm %s734_s0, 256  ;;  %p381_p5 = scmp.lt.u32.totalorder %s593_s28, %s734_s0 }
  0x1a   : > { %p378_p4 = pnand %p377_p3, %p376_p2  ;;  %p382_p8 = scmp.lt.u32.totalorder %s380_s8, %s375_s5 }
  0x1b   : > { %p384_p9 = scmp.lt.u32.totalorder %s375_s5, %s593_s28 }
  0x1c   : > { %p379_p7 = pneg %p378_p4  ;;  %p383_p10 = por %p382_p8, %p381_p5 }
  0x1e   : > { %p385_p0 = por %p384_p9, %p383_p10 }
  0x20   : > { %p386_p1 = pnand %p385_p0, %p379_p7 }
  0x22   : > { %389 = shalt.err (!%p386_p1)
}
  0x23   : > { %s390_s17 = scalar_lea.vmem %s603_s30, 128  ;;  %s507_s19 = smov [#allocation2]  }
  0x24   : > { %p391_p2 = scmp.ne.s32.totalorder %s603_s30, %s390_s17  ;;  %s395_s26 = sshll.u32 %s507_s19, 4  ;;  %s396_s26 = int_to_ptr.vmem [resolvable:$false] %s395_s26 }
  0x25   : > { %s397_s27 = scalar_lea.vmem %s396_s26, 256  ;;  %p398_p11 = scmp.lt.s32.totalorder %s603_s30, %s396_s26 }
  0x26   : > { %p393_p4 = pnand %p391_p2, %p377_p3  ;;  %p399_p5 = scmp.lt.s32.totalorder %s397_s27, %s390_s17 }
  0x28   : > { %p394_p12 = pneg %p393_p4  ;;  %p400_p8 = por %p399_p5, %p398_p11 }
  0x2a   : > { %p401_p9 = pnand %p400_p8, %p394_p12 }
  0x2c   : > { %404 = shalt.err (!%p401_p9)
}
  0x2d   : > { %333 = dma.hbm_to_vmem [thread:$0]  (!%p599_p13), %s593_s28, 128, %s603_s30, %s118_s4  }
  0x2e   : > { %p744_p0 = scmp.lt.s32.totalorder %s505_s12, 3  ;;  %p745_p1 = scmp.ge.s32.totalorder %s505_s12, 1 }
  0x2f   : > { %s646_s7 = scalar_lea.hbm %s735_s1, %s313_s24  ;;  %s139_s8 = scalar_lea.vmem [#allocation5], %s312_s25 }
  0x30   : > { %p637_p7 = pnand %p745_p1, %p744_p0  ;;  %s146_s14 = sshll.u32 %s139_s8, 4  ;;  %s147_s14 = int_to_ptr.vmem [resolvable:$true] %s146_s14 }
  0x31   : > { %s136_s28 = scalar_lea.sflag [#allocation6], %s584_s23  ;;  %s405_s30 = scalar_lea.hbm %s646_s7, 128 }
  0x32   : > { %s746_s29 = scalar_select %p637_p7, 1, 0 }
  0x33   : > { %p406_p11 = scmp.ne.s32.totalorder %s646_s7, %s405_s30  ;;  %s410_s24 = scalar_lea.hbm %s735_s1, 256 }
  0x34   : > { %p411_p2 = scmp.lt.u32.totalorder %s646_s7, %s735_s1  ;;  %p412_p4 = scmp.lt.u32.totalorder %s410_s24, %s405_s30 }
  0x35   : > { %p408_p12 = pnand %p406_p11, %p377_p3  ;;  %p414_p8 = scmp.lt.u32.totalorder %s405_s30, %s646_s7 }
  0x36   : > { %p413_p5 = por %p412_p4, %p411_p2 }
  0x37   : > { %p409_p10 = pneg %p408_p12 }
  0x38   : > { %p415_p9 = por %p414_p8, %p413_p5 }
  0x3a   : > { %p416_p0 = pnand %p415_p9, %p409_p10 }
  0x3c   : > { %419 = shalt.err (!%p416_p0)
}
  0x3d   : > { %s420_s23 = scalar_lea.vmem %s147_s14, 128  ;;  %s508_s25 = smov [#allocation5]  }
  0x3e   : > { %p421_p1 = scmp.ne.s32.totalorder %s147_s14, %s420_s23  ;;  %s425_s26 = sshll.u32 %s508_s25, 4  ;;  %s426_s26 = int_to_ptr.vmem [resolvable:$false] %s425_s26 }
  0x3f   : > { %s427_s27 = scalar_lea.vmem %s426_s26, 256  ;;  %p428_p6 = scmp.lt.s32.totalorder %s147_s14, %s426_s26 }
  0x40   : > { %p423_p11 = pnand %p421_p1, %p377_p3  ;;  %p429_p7 = scmp.lt.s32.totalorder %s427_s27, %s420_s23 }
  0x42   : > { %p424_p12 = pneg %p423_p11  ;;  %p430_p2 = por %p429_p7, %p428_p6 }
  0x44   : > { %p431_p4 = pnand %p430_p2, %p424_p12 }
  0x46   : > { %434 = shalt.err (!%p431_p4)
}
  0x47   : > { %336 = dma.hbm_to_vmem [thread:$0]  (!%p599_p13), %s646_s7, 128, %s147_s14, %s136_s28  }
  0x48   : > { %p747_p10 = scmp.ne.s32.totalorder %s746_s29, 0 }
  0x49   : > { %s673_s5 = sand.u32 (!%p747_p10), 1, %s497_s10   ;;  %p748_p3 = scmp.ne.s32.totalorder (!%p747_p10), %s740_s20, 0 }
  0x4a   : > { %155 = sbr.rel (%p747_p10) target bundleno = 110 (0x6e), region = 28  ;;  %s317_s6 = sshll.u32 (!%p747_p10), %s673_s5, 3 }
  0x4b   : > { %s158_s8 = scalar_lea.sflag (!%p747_p10), [#allocation3], %s673_s5  ;;  %s161_s30 = scalar_lea.vmem (!%p747_p10), [#allocation2], %s317_s6 }
  0x51   : > { %480 = dma.done.wait (%p748_p3), %s158_s8, 128  }
  0x52   : > { %482 = vsyncadd (%p748_p3), %s158_s8, 4294967168  ;;  %s167_s3 = scalar_lea.sflag [#allocation6], %s673_s5  ;;  %s170_s7 = scalar_lea.vmem [#allocation5], %s317_s6 }
  0x53   : > { %484 = dma.done.wait (%p748_p3), %s167_s3, 128  }
  0x54   : > { %486 = vsyncadd (%p748_p3), %s167_s3, 4294967168  ;;  %v196_v0 = vld [vmem:[%s161_s30] sm:$0xff]  ;;  %v197_v1 = vld [vmem:[%s170_s7] sm:$0xff]  ;;  %s195_s29 = scalar_lea.vmem [#allocation7], %s317_s6  ;;  %s321_s28 = sshll.u32 %s546_s13, 7 }
  0x55   : > { %s216_s14 = sshll.u32 %s195_s29, 4  ;;  %v198_v2 = vsub.f32 %v196_v0, %v197_v1  ;;  %s692_s20 = scalar_lea.hbm %s736_s2, %s321_s28  ;;  %s687_s14 = int_to_ptr.vmem [resolvable:$true] %s216_s14 }
  0x56   : > { %s203_s24 = scalar_lea.sflag [#allocation4], %s673_s5  ;;  %s435_s17 = scalar_lea.vmem %s687_s14, 128 }
  0x57   : > { %v199_v3 = vmul.f32 %v198_v2, %v198_v2  ;;  %p436_p6 = scmp.ne.s32.totalorder %s687_s14, %s435_s17  ;;  %p749_p13 = scmp.ne.s32.totalorder %s741_s21, 0 }
  0x58   : > { %s509_s13 = smov [#allocation7]  }
  0x59   : > { %201 = vst [vmem:[%s195_s29] sm:$0xff] %v199_v3  ;;  %p437_p7 = pnand %p436_p6, %p749_p13  ;;  %s439_s19 = sshll.u32 %s509_s13, 4  ;;  %s440_s19 = int_to_ptr.vmem [resolvable:$false] %s439_s19 }
  0x5a   : > { %s441_s23 = scalar_lea.vmem %s440_s19, 256  ;;  %p442_p8 = scmp.lt.s32.totalorder %s687_s14, %s440_s19 }
  0x5b   : > { %p438_p5 = pneg %p437_p7  ;;  %p443_p9 = scmp.lt.s32.totalorder %s441_s23, %s435_s17 }
  0x5d   : > { %p444_p0 = por %p443_p9, %p442_p8 }
  0x5f   : > { %p445_p1 = pnand %p444_p0, %p438_p5 }
  0x61   : > { %448 = shalt.err (!%p445_p1)
}
  0x62   : > { %s449_s25 = scalar_lea.hbm %s692_s20, 128  ;;  %s453_s5 = scalar_lea.hbm %s736_s2, 256 }
  0x63   : > { %p450_p11 = scmp.ne.s32.totalorder %s692_s20, %s449_s25  ;;  %p454_p4 = scmp.lt.u32.totalorder %s692_s20, %s736_s2 }
  0x64   : > { %p455_p10 = scmp.lt.u32.totalorder %s453_s5, %s449_s25  ;;  %p457_p6 = scmp.lt.u32.totalorder %s449_s25, %s692_s20 }
  0x65   : > { %p451_p12 = pnand %p450_p11, %p749_p13 }
  0x66   : > { %p456_p3 = por %p455_p10, %p454_p4 }
  0x67   : > { %p452_p2 = pneg %p451_p12 }
  0x68   : > { %p458_p7 = por %p457_p6, %p456_p3 }
  0x6a   : > { %p459_p5 = pnand %p458_p7, %p452_p2 }
  0x6c   : > { %462 = shalt.err (!%p459_p5)
}
  0x6d   : > { %328 = dma.vmem_to_hbm [thread:$0]  (%p749_p13), %s687_s14, 128, %s692_s20, %s203_s24  }
  0x6e PF: > { %s228_s30 = sand.u32 1, %s493_s9   ;;  %p750_p8 = scmp.ne.s32.totalorder %s742_s22, 0 }
  0x6f   : > { %p751_p9 = scmp.ge.s32.totalorder %s505_s12, 2  ;;  %s229_s3 = scalar_lea.sflag [#allocation4], %s228_s30 }
  0x71   : > { %p338_p0 = pnand %p751_p9, %p750_p8 }
  0x73   : > { %488 = dma.done.wait (!%p338_p0), %s229_s3, 128  }
  0x74   : > { %490 = vsyncadd (!%p338_p0), %s229_s3, 4294967168  ;;  %p18_p1 = scmp.ge.s32.totalorder %s550_s15, 4   ;;  %s752_s9 = smov %s497_s10 }
  0x75   : > { %s753_s10 = smov %s501_s11  ;;  %s754_s11 = smov %s562_s18 }
  0x76   : > { %s755_s12 = smov %s550_s15  ;;  %20 = sbr.rel (!%p18_p1) target bundleno = 7 (0x7), region = 86 }
  0x7d   :  { %234 = vsyncpa [#allocation3], 1 }
  0x7e   :  { %236 = vsyncpa [#allocation3 + $0x1], 1 }
  0x7f   :  { %237 = vsyncpa [#allocation6], 1 }
  0x80   :  { %239 = vsyncpa [#allocation6 + $0x1], 1 }
  0x81   :  { %240 = vsyncpa [#allocation4], 1 }
  0x82   :  { %242 = vsyncpa [#allocation4 + $0x1], 1 }

</bundles_post_ra>
